<compile_context>
chip_gen: v5e
topology: v5e:2x2
jax: 0.10.0
libtpu: 0.0.40
codegen_flags: <defaults>
</compile_context>

<pallas_src>
import jax
import jax.numpy as jnp
import numpy as np
from jax.experimental import pallas as pl
from jax.experimental.pallas import tpu as pltpu

Z_DIM = 16
DATA_DIM = 8          # `data_dim` in the original script (defined globally there)
BATCH = 8             # multiple of 8 (f32 sublane tile)

LANES = 128           # lane-dense width used for every tensor inside the kernel
_VEC_ROWS = 8         # one (8,128) block holds all 1-D params, one per sublane
_W_NAMES = ("gW1", "gW2", "gW3", "mW1", "mW2", "mW3")
_W_OFF = {n: _VEC_ROWS + i * LANES for i, n in enumerate(_W_NAMES)}
PARAM_ROWS = _VEC_ROWS + len(_W_NAMES) * LANES        # 776 rows x 128 lanes, f32
_V_ROW = {"gam1": 0, "bet1": 1, "gam2": 2, "bet2": 3,
          "gb3": 4, "mb1": 5, "mb2": 6, "mb3": 7}


def _leaky(v):
    # nn.LeakyReLU default negative_slope = 0.01
    return jnp.where(v > 0, v, 0.01 * v)


def _bn_train(h, gamma, beta):
    # nn.BatchNorm1d training-mode forward (biased variance, eps=1e-5),
    # gamma folded into a single scale, var via E[h^2] - mu^2 (one pass).
    mu = jnp.mean(h, axis=0, keepdims=True)
    var = jnp.mean(h * h, axis=0, keepdims=True) - mu * mu
    scale = gamma * jax.lax.rsqrt(var + 1e-5)
    return h * scale + (beta - mu * scale)


def generator_kernel(act_ref, p_ref, out_ref):
    B = act_ref.shape[0] // 2
    z = act_ref[0:B, :]            # (B,128), lanes >= Z_DIM are zero
    zx = act_ref[B:2 * B, :]       # (B,128), lanes >= DATA_DIM are zero

    vecs = p_ref[0:_VEC_ROWS, :]   # (8,128): all 1-D params

    def vec(name):
        r = _V_ROW[name]
        return vecs[r:r + 1, :]                       # (1,128), broadcast below

    def wgt(name):
        r = _W_OFF[name]
        return p_ref[r:r + LANES, :]                  # (128,128), zero-padded

    # ---------------- G(z) ----------------
    # gb1 / gb2 (pre-BatchNorm biases) are cancelled by the mean subtraction,
    # so they are omitted from the packed params and the compute.
    h = jnp.dot(z, wgt("gW1"), preferred_element_type=jnp.float32)
    h = _leaky(_bn_train(h, vec("gam1"), vec("bet1")))
    h = jnp.dot(h, wgt("gW2"), preferred_element_type=jnp.float32)
    h = _leaky(_bn_train(h, vec("gam2"), vec("bet2")))
    x = jax.nn.sigmoid(
        jnp.dot(h, wgt("gW3"), preferred_element_type=jnp.float32) + vec("gb3"))
    # lanes >= DATA_DIM of x hold sigmoid(0)=0.5; they only ever hit zero rows
    # of mW1 below and are dropped by the wrapper slice, so they never matter.

    # -------- shared mlp on the sublane-stacked [x ; z_x] (single pass) -------
    # mW1 rows >= DATA_DIM-1 are zero, which implements the [:, :-1] slices.
    v = jnp.concatenate([x, zx], axis=0)                                  # (2B,128)
    a = _leaky(jnp.dot(v, wgt("mW1"), preferred_element_type=jnp.float32) + vec("mb1"))
    a = _leaky(jnp.dot(a, wgt("mW2"), preferred_element_type=jnp.float32) + vec("mb2"))
    y = jnp.dot(a, wgt("mW3"), preferred_element_type=jnp.float32) + vec("mb3")

    # ------ single lane-dense (3B,128) output slab, full-width unmasked stores
    out_ref[0:B, :] = x            # rows [0,B)  : x  (lanes 0..DATA_DIM-1)
    out_ref[B:3 * B, :] = y        # rows [B,2B) : y1 ; rows [2B,3B): y2 (lane 0)


def init_params(key):
    """PyTorch-faithful parameters. Linear weights stored as (in, out)."""
    ks = jax.random.split(key, 6)
    s = 0.1

    def lin(k, fan_in, fan_out):
        kw, kb = jax.random.split(k)
        W = jax.random.normal(kw, (fan_in, fan_out), jnp.float32) * s
        b = jax.random.normal(kb, (1, fan_out), jnp.float32) * s
        return W, b

    gW1, gb1 = lin(ks[0], Z_DIM, 32)
    gam1 = jnp.ones((1, 32), jnp.float32)
    bet1 = jnp.zeros((1, 32), jnp.float32)
    gW2, gb2 = lin(ks[1], 32, 32)
    gam2 = jnp.ones((1, 32), jnp.float32)
    bet2 = jnp.zeros((1, 32), jnp.float32)
    gW3, gb3 = lin(ks[2], 32, DATA_DIM)

    mW1, mb1 = lin(ks[3], DATA_DIM - 1, 32)   # Linear(data_dim-1, 32)
    mW2, mb2 = lin(ks[4], 32, 8)
    mW3, mb3 = lin(ks[5], 8, 1)

    return (gW1, gb1, gam1, bet1, gW2, gb2, gam2, bet2, gW3, gb3,
            mW1, mb1, mW2, mb2, mW3, mb3)


def pack_params(params):
    """Pack all live parameters into one lane-dense (PARAM_ROWS, 128) f32 slab.

    Rows 0..7   : gam1, bet1, gam2, bet2, gb3, mb1, mb2, mb3 (one per sublane).
    Rows 8..775 : gW1, gW2, gW3, mW1, mW2, mW3, each zero-padded to (128,128).
    gb1 / gb2 (pre-BatchNorm biases) are mathematically dead and not packed.
    Zero-padding mW1's input rows beyond DATA_DIM-1 implements the [:, :-1] slice.
    """
    (gW1, _gb1, gam1, bet1, gW2, _gb2, gam2, bet2, gW3, gb3,
     mW1, mb1, mW2, mb2, mW3, mb3) = params

    def pad_w(W):
        return jnp.zeros((LANES, LANES), jnp.float32).at[:W.shape[0], :W.shape[1]].set(W)

    def pad_v(v):
        return jnp.zeros((1, LANES), jnp.float32).at[:, :v.shape[1]].set(v)

    vecs = jnp.concatenate(
        [pad_v(v) for v in (gam1, bet1, gam2, bet2, gb3, mb1, mb2, mb3)], axis=0)
    slab = jnp.concatenate(
        [vecs] + [pad_w(W) for W in (gW1, gW2, gW3, mW1, mW2, mW3)], axis=0)
    assert slab.shape == (PARAM_ROWS, LANES)
    return slab


def generator_forward(z, z_x, param_slab):
    B = z.shape[0]
    assert B % 8 == 0, "batch must be a multiple of 8 (f32 sublane tile)"
    # One lane-dense activation slab: rows [0,B)=z, [B,2B)=z_x (zero-padded lanes).
    act = jnp.concatenate(
        [jnp.pad(z, ((0, 0), (0, LANES - Z_DIM))),
         jnp.pad(z_x, ((0, 0), (0, LANES - DATA_DIM)))], axis=0)

    vmem = pl.BlockSpec(memory_space=pltpu.MemorySpace.VMEM)
    out = pl.pallas_call(
        generator_kernel,
        out_shape=jax.ShapeDtypeStruct((3 * B, LANES), jnp.float32),
        in_specs=[vmem, vmem],
        out_specs=vmem,
    )(act, param_slab)

    x = out[:B, :DATA_DIM]
    y1 = out[B:2 * B, 0:1]
    y2 = out[2 * B:3 * B, 0:1]
    return x, x[:, -1], y1, y2


def reference_forward(z, z_x, params):
    """Pure-JAX faithful port of the PyTorch Generator.forward (incl. gb1/gb2)."""
    (gW1, gb1, gam1, bet1, gW2, gb2, gam2, bet2, gW3, gb3,
     mW1, mb1, mW2, mb2, mW3, mb3) = params

    def bn(h, gamma, beta):
        mu = jnp.mean(h, axis=0, keepdims=True)
        var = jnp.mean((h - mu) ** 2, axis=0, keepdims=True)
        return (h - mu) / jnp.sqrt(var + 1e-5) * gamma + beta

    def leaky(v):
        return jnp.where(v > 0, v, 0.01 * v)

    h = leaky(bn(z @ gW1 + gb1, gam1, bet1))
    h = leaky(bn(h @ gW2 + gb2, gam2, bet2))
    x = jax.nn.sigmoid(h @ gW3 + gb3)

    def mlp(v):
        a = leaky(v[:, :-1] @ mW1 + mb1)
        a = leaky(a @ mW2 + mb2)
        return a @ mW3 + mb3

    return x, x[:, -1], mlp(x), mlp(z_x)


if __name__ == "__main__":
    key = jax.random.PRNGKey(0)
    kz, kx, kp = jax.random.split(key, 3)
    z = jax.random.normal(kz, (BATCH, Z_DIM), jnp.float32)
    z_x = jax.random.normal(kx, (BATCH, DATA_DIM), jnp.float32)
    params = init_params(kp)
    slab = pack_params(params)

    out = generator_forward(z, z_x, slab)
    out = jax.block_until_ready(out)

    ref = reference_forward(z, z_x, params)
    for o, r in zip(out, ref):
        np.testing.assert_allclose(np.asarray(o), np.asarray(r), rtol=5e-4, atol=1e-5)

    # TODO(synk): BatchNorm1d running_mean/running_var buffer updates (stateful
    # training bookkeeping) are not modeled; this is the training-mode forward only.
    print("KERNEL_OK")
</pallas_src>

<mosaic_0001>
module attributes {stable_mosaic.version = 11 : i64} {
  func.func @generator_kernel(%arg0: memref<16x128xf32, #tpu.memory_space<vmem>>, %arg1: memref<776x128xf32, #tpu.memory_space<vmem>>, %arg2: memref<24x128xf32, #tpu.memory_space<vmem>>) attributes {dimension_semantics = [], scalar_prefetch = 0 : i64, scratch_operands = 0 : i64, tpu.core_type = #tpu.core_type<tc>} {
    %c0 = arith.constant 0 : index
    %c0_0 = arith.constant 0 : index
    %0 = vector.load %arg0[%c0, %c0_0] : memref<16x128xf32, #tpu.memory_space<vmem>>, vector<8x128xf32>
    %c8 = arith.constant 8 : index
    %c0_1 = arith.constant 0 : index
    %1 = vector.load %arg0[%c8, %c0_1] : memref<16x128xf32, #tpu.memory_space<vmem>>, vector<8x128xf32>
    %c0_2 = arith.constant 0 : index
    %c0_3 = arith.constant 0 : index
    %2 = vector.load %arg1[%c0_2, %c0_3] : memref<776x128xf32, #tpu.memory_space<vmem>>, vector<8x128xf32>
    %c8_4 = arith.constant 8 : index
    %c0_5 = arith.constant 0 : index
    %3 = vector.load %arg1[%c8_4, %c0_5] : memref<776x128xf32, #tpu.memory_space<vmem>>, vector<128x128xf32>
    %cst = arith.constant dense<0.000000e+00> : vector<8x128xf32>
    %4 = tpu.matmul %0, %3, %cst {dimension_numbers = #tpu.dot_dimension_numbers<[1], [0], [0], [1], [0, 0, 1, 1], [], []>} : vector<8x128xf32>, vector<128x128xf32>, vector<8x128xf32> -> vector<8x128xf32>
    %5 = vector.extract_strided_slice %2 {offsets = [0, 0], sizes = [1, 128], strides = [1, 1]} : vector<8x128xf32> to vector<1x128xf32>
    %6 = vector.extract_strided_slice %2 {offsets = [1, 0], sizes = [1, 128], strides = [1, 1]} : vector<8x128xf32> to vector<1x128xf32>
    %cst_6 = arith.constant dense<0.000000e+00> : vector<128xf32>
    %7 = vector.multi_reduction <add>, %4, %cst_6 [0] : vector<8x128xf32> to vector<128xf32>
    %8 = vector.shape_cast %7 : vector<128xf32> to vector<1x128xf32>
    %cst_7 = arith.constant 8.000000e+00 : f32
    %9 = vector.broadcast %cst_7 : f32 to vector<1x128xf32>
    %10 = arith.divf %8, %9 : vector<1x128xf32>
    %11 = arith.mulf %4, %4 : vector<8x128xf32>
    %cst_8 = arith.constant dense<0.000000e+00> : vector<128xf32>
    %12 = vector.multi_reduction <add>, %11, %cst_8 [0] : vector<8x128xf32> to vector<128xf32>
    %13 = vector.shape_cast %12 : vector<128xf32> to vector<1x128xf32>
    %cst_9 = arith.constant 8.000000e+00 : f32
    %14 = vector.broadcast %cst_9 : f32 to vector<1x128xf32>
    %15 = arith.divf %13, %14 : vector<1x128xf32>
    %16 = arith.mulf %10, %10 : vector<1x128xf32>
    %17 = arith.subf %15, %16 : vector<1x128xf32>
    %cst_10 = arith.constant 9.99999974E-6 : f32
    %18 = vector.broadcast %cst_10 : f32 to vector<1x128xf32>
    %19 = arith.addf %17, %18 : vector<1x128xf32>
    %20 = math.rsqrt %19 : vector<1x128xf32>
    %21 = arith.mulf %5, %20 : vector<1x128xf32>
    %22 = vector.broadcast %21 : vector<1x128xf32> to vector<8x128xf32>
    %23 = arith.mulf %4, %22 : vector<8x128xf32>
    %24 = arith.mulf %10, %21 : vector<1x128xf32>
    %25 = arith.subf %6, %24 : vector<1x128xf32>
    %26 = vector.broadcast %25 : vector<1x128xf32> to vector<8x128xf32>
    %27 = arith.addf %23, %26 : vector<8x128xf32>
    %cst_11 = arith.constant 0.000000e+00 : f32
    %28 = vector.broadcast %cst_11 : f32 to vector<8x128xf32>
    %29 = arith.cmpf ogt, %27, %28 : vector<8x128xf32>
    %cst_12 = arith.constant 0.00999999977 : f32
    %30 = vector.broadcast %cst_12 : f32 to vector<8x128xf32>
    %31 = arith.mulf %30, %27 : vector<8x128xf32>
    %32 = arith.select %29, %27, %31 : vector<8x128xi1>, vector<8x128xf32>
    %c136 = arith.constant 136 : index
    %c0_13 = arith.constant 0 : index
    %33 = vector.load %arg1[%c136, %c0_13] : memref<776x128xf32, #tpu.memory_space<vmem>>, vector<128x128xf32>
    %cst_14 = arith.constant dense<0.000000e+00> : vector<8x128xf32>
    %34 = tpu.matmul %32, %33, %cst_14 {dimension_numbers = #tpu.dot_dimension_numbers<[1], [0], [0], [1], [0, 0, 1, 1], [], []>} : vector<8x128xf32>, vector<128x128xf32>, vector<8x128xf32> -> vector<8x128xf32>
    %35 = vector.extract_strided_slice %2 {offsets = [2, 0], sizes = [1, 128], strides = [1, 1]} : vector<8x128xf32> to vector<1x128xf32>
    %36 = vector.extract_strided_slice %2 {offsets = [3, 0], sizes = [1, 128], strides = [1, 1]} : vector<8x128xf32> to vector<1x128xf32>
    %cst_15 = arith.constant dense<0.000000e+00> : vector<128xf32>
    %37 = vector.multi_reduction <add>, %34, %cst_15 [0] : vector<8x128xf32> to vector<128xf32>
    %38 = vector.shape_cast %37 : vector<128xf32> to vector<1x128xf32>
    %cst_16 = arith.constant 8.000000e+00 : f32
    %39 = vector.broadcast %cst_16 : f32 to vector<1x128xf32>
    %40 = arith.divf %38, %39 : vector<1x128xf32>
    %41 = arith.mulf %34, %34 : vector<8x128xf32>
    %cst_17 = arith.constant dense<0.000000e+00> : vector<128xf32>
    %42 = vector.multi_reduction <add>, %41, %cst_17 [0] : vector<8x128xf32> to vector<128xf32>
    %43 = vector.shape_cast %42 : vector<128xf32> to vector<1x128xf32>
    %cst_18 = arith.constant 8.000000e+00 : f32
    %44 = vector.broadcast %cst_18 : f32 to vector<1x128xf32>
    %45 = arith.divf %43, %44 : vector<1x128xf32>
    %46 = arith.mulf %40, %40 : vector<1x128xf32>
    %47 = arith.subf %45, %46 : vector<1x128xf32>
    %cst_19 = arith.constant 9.99999974E-6 : f32
    %48 = vector.broadcast %cst_19 : f32 to vector<1x128xf32>
    %49 = arith.addf %47, %48 : vector<1x128xf32>
    %50 = math.rsqrt %49 : vector<1x128xf32>
    %51 = arith.mulf %35, %50 : vector<1x128xf32>
    %52 = vector.broadcast %51 : vector<1x128xf32> to vector<8x128xf32>
    %53 = arith.mulf %34, %52 : vector<8x128xf32>
    %54 = arith.mulf %40, %51 : vector<1x128xf32>
    %55 = arith.subf %36, %54 : vector<1x128xf32>
    %56 = vector.broadcast %55 : vector<1x128xf32> to vector<8x128xf32>
    %57 = arith.addf %53, %56 : vector<8x128xf32>
    %cst_20 = arith.constant 0.000000e+00 : f32
    %58 = vector.broadcast %cst_20 : f32 to vector<8x128xf32>
    %59 = arith.cmpf ogt, %57, %58 : vector<8x128xf32>
    %cst_21 = arith.constant 0.00999999977 : f32
    %60 = vector.broadcast %cst_21 : f32 to vector<8x128xf32>
    %61 = arith.mulf %60, %57 : vector<8x128xf32>
    %62 = arith.select %59, %57, %61 : vector<8x128xi1>, vector<8x128xf32>
    %c264 = arith.constant 264 : index
    %c0_22 = arith.constant 0 : index
    %63 = vector.load %arg1[%c264, %c0_22] : memref<776x128xf32, #tpu.memory_space<vmem>>, vector<128x128xf32>
    %cst_23 = arith.constant dense<0.000000e+00> : vector<8x128xf32>
    %64 = tpu.matmul %62, %63, %cst_23 {dimension_numbers = #tpu.dot_dimension_numbers<[1], [0], [0], [1], [0, 0, 1, 1], [], []>} : vector<8x128xf32>, vector<128x128xf32>, vector<8x128xf32> -> vector<8x128xf32>
    %65 = vector.extract_strided_slice %2 {offsets = [4, 0], sizes = [1, 128], strides = [1, 1]} : vector<8x128xf32> to vector<1x128xf32>
    %66 = vector.broadcast %65 : vector<1x128xf32> to vector<8x128xf32>
    %67 = arith.addf %64, %66 : vector<8x128xf32>
    %68 = arith.negf %67 : vector<8x128xf32>
    %69 = math.exp %68 : vector<8x128xf32>
    %cst_24 = arith.constant 1.000000e+00 : f32
    %70 = vector.broadcast %cst_24 : f32 to vector<8x128xf32>
    %71 = arith.addf %70, %69 : vector<8x128xf32>
    %72 = arith.divf %70, %71 : vector<8x128xf32>
    %73 = tpu.concatenate %72, %1 in 0 : vector<8x128xf32>, vector<8x128xf32> -> vector<16x128xf32>
    %c392 = arith.constant 392 : index
    %c0_25 = arith.constant 0 : index
    %74 = vector.load %arg1[%c392, %c0_25] : memref<776x128xf32, #tpu.memory_space<vmem>>, vector<128x128xf32>
    %cst_26 = arith.constant dense<0.000000e+00> : vector<16x128xf32>
    %75 = tpu.matmul %73, %74, %cst_26 {dimension_numbers = #tpu.dot_dimension_numbers<[1], [0], [0], [1], [0, 0, 1, 1], [], []>} : vector<16x128xf32>, vector<128x128xf32>, vector<16x128xf32> -> vector<16x128xf32>
    %76 = vector.extract_strided_slice %2 {offsets = [5, 0], sizes = [1, 128], strides = [1, 1]} : vector<8x128xf32> to vector<1x128xf32>
    %77 = vector.broadcast %76 : vector<1x128xf32> to vector<16x128xf32>
    %78 = arith.addf %75, %77 : vector<16x128xf32>
    %cst_27 = arith.constant 0.000000e+00 : f32
    %79 = vector.broadcast %cst_27 : f32 to vector<16x128xf32>
    %80 = arith.cmpf ogt, %78, %79 : vector<16x128xf32>
    %cst_28 = arith.constant 0.00999999977 : f32
    %81 = vector.broadcast %cst_28 : f32 to vector<16x128xf32>
    %82 = arith.mulf %81, %78 : vector<16x128xf32>
    %83 = arith.select %80, %78, %82 : vector<16x128xi1>, vector<16x128xf32>
    %c520 = arith.constant 520 : index
    %c0_29 = arith.constant 0 : index
    %84 = vector.load %arg1[%c520, %c0_29] : memref<776x128xf32, #tpu.memory_space<vmem>>, vector<128x128xf32>
    %cst_30 = arith.constant dense<0.000000e+00> : vector<16x128xf32>
    %85 = tpu.matmul %83, %84, %cst_30 {dimension_numbers = #tpu.dot_dimension_numbers<[1], [0], [0], [1], [0, 0, 1, 1], [], []>} : vector<16x128xf32>, vector<128x128xf32>, vector<16x128xf32> -> vector<16x128xf32>
    %86 = vector.extract_strided_slice %2 {offsets = [6, 0], sizes = [1, 128], strides = [1, 1]} : vector<8x128xf32> to vector<1x128xf32>
    %87 = vector.broadcast %86 : vector<1x128xf32> to vector<16x128xf32>
    %88 = arith.addf %85, %87 : vector<16x128xf32>
    %cst_31 = arith.constant 0.000000e+00 : f32
    %89 = vector.broadcast %cst_31 : f32 to vector<16x128xf32>
    %90 = arith.cmpf ogt, %88, %89 : vector<16x128xf32>
    %cst_32 = arith.constant 0.00999999977 : f32
    %91 = vector.broadcast %cst_32 : f32 to vector<16x128xf32>
    %92 = arith.mulf %91, %88 : vector<16x128xf32>
    %93 = arith.select %90, %88, %92 : vector<16x128xi1>, vector<16x128xf32>
    %c648 = arith.constant 648 : index
    %c0_33 = arith.constant 0 : index
    %94 = vector.load %arg1[%c648, %c0_33] : memref<776x128xf32, #tpu.memory_space<vmem>>, vector<128x128xf32>
    %cst_34 = arith.constant dense<0.000000e+00> : vector<16x128xf32>
    %95 = tpu.matmul %93, %94, %cst_34 {dimension_numbers = #tpu.dot_dimension_numbers<[1], [0], [0], [1], [0, 0, 1, 1], [], []>} : vector<16x128xf32>, vector<128x128xf32>, vector<16x128xf32> -> vector<16x128xf32>
    %96 = vector.extract_strided_slice %2 {offsets = [7, 0], sizes = [1, 128], strides = [1, 1]} : vector<8x128xf32> to vector<1x128xf32>
    %97 = vector.broadcast %96 : vector<1x128xf32> to vector<16x128xf32>
    %98 = arith.addf %95, %97 : vector<16x128xf32>
    %c0_35 = arith.constant 0 : index
    %c0_36 = arith.constant 0 : index
    %99 = vector.load %arg2[%c0_35, %c0_36] : memref<24x128xf32, #tpu.memory_space<vmem>>, vector<8x128xf32>
    tpu.vector_store %arg2[%c0_35, %c0_36], %72 {strides = array<i32>} : memref<24x128xf32, #tpu.memory_space<vmem>>, vector<8x128xf32>,
    %c8_37 = arith.constant 8 : index
    %c0_38 = arith.constant 0 : index
    %100 = vector.load %arg2[%c8_37, %c0_38] : memref<24x128xf32, #tpu.memory_space<vmem>>, vector<16x128xf32>
    tpu.vector_store %arg2[%c8_37, %c0_38], %98 {strides = array<i32>} : memref<24x128xf32, #tpu.memory_space<vmem>>, vector<16x128xf32>,
    return
  }
}

</mosaic_0001>

<bundles_post_ra>
// kernel: tpu_custom_call.1
= control target key start
LH: loop header
LB: loop body
LE: loop exit
PB: predicated region body
PF: predicated region fallthrough
CT: control target
= control target key end

     0   :  { %7 = vsyncpa [#allocation3], 0  ;;  %s585_s0 = inlined_call_operand.hbm [shape: f32[16,128], index: 0, kind: input, shape index: {}]   ;;  %s586_s1 = inlined_call_operand.hbm [shape: f32[776,128], index: 1, kind: input, shape index: {}]   ;;  %s587_s2 = inlined_call_operand.hbm [shape: f32[24,128], index: 2, kind: output, shape index: {}]  }
   0x1   :  { %8 = vsyncpa [#allocation6], 0 }
   0x2   :  { %9 = vsyncpa [#allocation4], 0  ;;  %s14_s11 = sshll.u32 %s585_s0, 4  ;;  %s530_s12 = smov [#allocation2]   ;;  %s15_s11 = int_to_ptr.hbm [resolvable:$true] %s14_s11 }
   0x3   :  { %s16_s13 = sshll.u32 %s530_s12, 4  ;;  %s27_s16 = sshll.u32 %s586_s1, 4  ;;  %s17_s13 = int_to_ptr.vmem [resolvable:$true] %s16_s13  ;;  %s28_s16 = int_to_ptr.hbm [resolvable:$true] %s27_s16 }
   0x4   :  { %s531_s17 = smov 128   ;;  %s532_s18 = smov 8  }
   0x5   :  { %22 = dma.hbm_to_vmem [thread:$0]  %s15_s11, 256, %s17_s13, [#allocation3], %s531_s17, %s531_s17, %s532_s18  }
   0x6   :  { %s533_s19 = smov [#allocation5]  }
   0x7   :  { %s29_s20 = sshll.u32 %s533_s19, 4  ;;  %s30_s20 = int_to_ptr.vmem [resolvable:$true] %s29_s20 }
   0x8   :  { %35 = dma.hbm_to_vmem [thread:$0]  %s28_s16, 12416, %s30_s20, [#allocation6], %s531_s17, %s531_s17, %s532_s18  }
   0x9   :  { %524 = dma.done.wait [#allocation3], 256  }
   0xa   :  { %525 = vsyncadd [#allocation3], 4294967040 }
   0xb   :  { %526 = dma.done.wait [#allocation6], 12416  }
   0xc   :  { %527 = vsyncadd [#allocation6], 4294954880  ;;  %v62_v0 = vld [vmem:[#allocation5 + $0x80] sm:$0xff]  ;;  %v61_v1 = vld [vmem:[#allocation5 + $0x78] sm:$0xff]  ;;  %v534_v17 = vmov 8.0   ;;  %s535_s0 = smov [#allocation7]  }
   0xd   :  { %63 = vmatpush.msra.mxu2 %v62_v0  ;;  %v60_v2 = vld [vmem:[#allocation5 + $0x70] sm:$0xff]  ;;  %v59_v3 = vld [vmem:[#allocation5 + $0x68] sm:$0xff]  ;;  %v58_v4 = vld [vmem:[#allocation5 + $0x60] sm:$0xff]  ;;  %442 = vrcp.f32 %v534_v17  ;;  %s403_s1 = sshll.u32 %s535_s0, 4  ;;  %s405_s23 = sshll.u32 %s587_s2, 4  ;;  %s404_s1 = int_to_ptr.vmem [resolvable:$true] %s403_s1  ;;  %s406_s23 = int_to_ptr.hbm [resolvable:$true] %s405_s23 }
   0xe   :  { %v57_v5 = vld [vmem:[#allocation5 + $0x58] sm:$0xff]  ;;  %v56_v6 = vld [vmem:[#allocation5 + $0x50] sm:$0xff]  ;;  %v55_v7 = vld [vmem:[#allocation5 + $0x48] sm:$0xff] }
   0xf   :  { %64 = vmatpush.msra.mxu2 %v61_v1  ;;  %v54_v8 = vld [vmem:[#allocation5 + $0x40] sm:$0xff]  ;;  %v53_v9 = vld [vmem:[#allocation5 + $0x38] sm:$0xff]  ;;  %v52_v10 = vld [vmem:[#allocation5 + $0x30] sm:$0xff] }
  0x10   :  { %v51_v11 = vld [vmem:[#allocation5 + $0x28] sm:$0xff]  ;;  %v50_v12 = vld [vmem:[#allocation5 + $0x20] sm:$0xff]  ;;  %v49_v13 = vld [vmem:[#allocation5 + $0x18] sm:$0xff] }
  0x11   :  { %65 = vmatpush.msra.mxu2 %v60_v2  ;;  %v48_v14 = vld [vmem:[#allocation5 + $0x10] sm:$0xff]  ;;  %v47_v15 = vld [vmem:[#allocation5 + $0x8] sm:$0xff]  ;;  %v146_v18 = vld [vmem:[#allocation5 + $0x100] sm:$0xff] }
  0x12   :  { %v44_v16 = vld [vmem:[#allocation2] sm:$0xff]  ;;  %147 = vmatpush.msra.mxu1 %v146_v18  ;;  %v145_v20 = vld [vmem:[#allocation5 + $0xf8] sm:$0xff]  ;;  %v143_v23 = vld [vmem:[#allocation5 + $0xe8] sm:$0xff] }
  0x13   :  { %66 = vmatpush.msra.mxu2 %v59_v3  ;;  %v443_v19 = vpop.eup %442  ;;  %v144_v22 = vld [vmem:[#allocation5 + $0xf0] sm:$0xff]  ;;  %v142_v25 = vld [vmem:[#allocation5 + $0xe0] sm:$0xff]  ;;  %v141_v27 = vld [vmem:[#allocation5 + $0xd8] sm:$0xff] }
  0x14   :  { %148 = vmatpush.msra.mxu1 %v145_v20  ;;  %v90_v21 = vmul.f32 8.0, %v443_v19  ;;  %v140_v31 = vld [vmem:[#allocation5 + $0xd0] sm:$0xff]  ;;  %v139_v34 = vld [vmem:[#allocation5 + $0xc8] sm:$0xff]  ;;  %v138_v38 = vld [vmem:[#allocation5 + $0xc0] sm:$0xff]  ;;  %vm94_vm0 = vweird.f32 %v443_v19 }
  0x15   :  { %67 = vmatpush.msra.mxu2 %v58_v4  ;;  %v137_v41 = vld [vmem:[#allocation5 + $0xb8] sm:$0xff]  ;;  %v136_v45 = vld [vmem:[#allocation5 + $0xb0] sm:$0xff]  ;;  %v135_v48 = vld [vmem:[#allocation5 + $0xa8] sm:$0xff] }
  0x16   :  { %149 = vmatpush.msra.mxu1 %v144_v22  ;;  %v91_v24 = vsub.f32 1.0, %v90_v21  ;;  %v134_v49 = vld [vmem:[#allocation5 + $0xa0] sm:$0xff]  ;;  %v133_v52 = vld [vmem:[#allocation5 + $0x98] sm:$0xff]  ;;  %v132_v55 = vld [vmem:[#allocation5 + $0x90] sm:$0xff] }
  0x17   :  { %68 = vmatpush.msra.mxu2 %v57_v5  ;;  %v131_v57 = vld [vmem:[#allocation5 + $0x88] sm:$0xff]  ;;  %v567_v0 = vld [vmem:[#allocation5] sm:$0xff]  ;;  %v217_v22 = vld [vmem:[#allocation5 + $0x150] sm:$0xff] }
  0x18   :  { %150 = vmatpush.msra.mxu1 %v143_v23  ;;  %v92_v30 = vmul.f32 %v443_v19, %v91_v24  ;;  %v219_v17 = vld [vmem:[#allocation5 + $0x160] sm:$0xff] }
  0x19   :  { %69 = vmatpush.msra.mxu2 %v56_v6 }
  0x1a   :  { %151 = vmatpush.msra.mxu1 %v142_v25  ;;  %v93_v37 = vadd.f32 %v443_v19, %v92_v30  ;;  %v216_v25 = vld [vmem:[#allocation5 + $0x148] sm:$0xff] }
  0x1b   :  { %70 = vmatpush.msra.mxu2 %v55_v7 }
  0x1c   :  { %152 = vmatpush.msra.mxu1 %v141_v27  ;;  %v563_v44 = vsel %vm94_vm0, %v443_v19, %v93_v37  ;;  %v218_v19 = vld [vmem:[#allocation5 + $0x158] sm:$0xff]  ;;  %v212_v37 = vld [vmem:[#allocation5 + $0x128] sm:$0xff] }
  0x1d   :  { %71 = vmatpush.msra.mxu2 %v54_v8 }
  0x1e   :  { %153 = vmatpush.msra.mxu1 %v140_v31  ;;  %v214_v31 = vld [vmem:[#allocation5 + $0x138] sm:$0xff] }
  0x1f   :  { %72 = vmatpush.msra.mxu2 %v53_v9 }
  0x20   :  { %154 = vmatpush.msra.mxu1 %v139_v34  ;;  %v213_v34 = vld [vmem:[#allocation5 + $0x130] sm:$0xff] }
  0x21   :  { %73 = vmatpush.msra.mxu2 %v52_v10 }
  0x22   :  { %155 = vmatpush.msra.mxu1 %v138_v38  ;;  %v211_v38 = vld [vmem:[#allocation5 + $0x120] sm:$0xff] }
  0x23   :  { %74 = vmatpush.msra.mxu2 %v51_v11 }
  0x24   :  { %156 = vmatpush.msra.mxu1 %v137_v41  ;;  %v210_v41 = vld [vmem:[#allocation5 + $0x118] sm:$0xff] }
  0x25   :  { %75 = vmatpush.msra.mxu2 %v50_v12 }
  0x26   :  { %157 = vmatpush.msra.mxu1 %v136_v45  ;;  %v209_v45 = vld [vmem:[#allocation5 + $0x110] sm:$0xff] }
  0x27   :  { %76 = vmatpush.msra.mxu2 %v49_v13  ;;  %v223_v13 = vld [vmem:[#allocation5 + $0x180] sm:$0xff] }
  0x28   :  { %158 = vmatpush.msra.mxu1 %v135_v48 }
  0x29   :  { %77 = vmatpush.msra.mxu2 %v48_v14  ;;  %v222_v14 = vld [vmem:[#allocation5 + $0x178] sm:$0xff] }
  0x2a   :  { %159 = vmatpush.msra.mxu1 %v134_v49 }
  0x2b   :  { %78 = vmatpush.msra.mxu2 %v47_v15  ;;  %v221_v15 = vld [vmem:[#allocation5 + $0x170] sm:$0xff] }
  0x2c   :  { %79 = vmatmul.f32.vlgmr.msra.gmra.mxu2 %v44_v16  ;;  %160 = vmatpush.msra.mxu1 %v133_v52  ;;  %v220_v16 = vld [vmem:[#allocation5 + $0x168] sm:$0xff] }
  0x2d   :  { %225 = vmatpush.msrb.mxu2 %v223_v13  ;;  %v268_v13 = vld [vmem:[#allocation5 + $0x1a8] sm:$0xff] }
  0x2e   :  { %161 = vmatpush.msra.mxu1 %v132_v55 }
  0x2f   :  { %226 = vmatpush.msrb.mxu2 %v222_v14  ;;  %v267_v14 = vld [vmem:[#allocation5 + $0x1a0] sm:$0xff] }
  0x30   :  { %162 = vmatpush.msra.mxu1 %v131_v57 }
  0x31   :  { %227 = vmatpush.msrb.mxu2 %v221_v15  ;;  %v266_v15 = vld [vmem:[#allocation5 + $0x198] sm:$0xff] }
  0x33   :  { %228 = vmatpush.msrb.mxu2 %v220_v16  ;;  %v265_v16 = vld [vmem:[#allocation5 + $0x190] sm:$0xff] }
  0x35   :  { %229 = vmatpush.msrb.mxu2 %v219_v17  ;;  %v264_v17 = vld [vmem:[#allocation5 + $0x188] sm:$0xff] }
  0x37   :  { %230 = vmatpush.msrb.mxu2 %v218_v19 }
  0x39   :  { %231 = vmatpush.msrb.mxu2 %v217_v22  ;;  %v325_v22 = vld [vmem:[#allocation5 + $0x280] sm:$0xff] }
  0x3a   :  { %327 = vmatpush.msra.mxu0 %v325_v22  ;;  %v372_v22 = vperm.slane %v567_v0, 7 }
  0x3b   :  { %232 = vmatpush.msrb.mxu2 %v216_v25 }
  0xaf   :  { %v80_v26 = vpop.f32.mrf.mxu2 }
  0xb0   :  { %v83_v28 = vrot.slane %v80_v26, 4  ;;  %v97_v29 = vmul.f32 %v80_v26, %v80_v26 }
  0xb2   :  { %v84_v32 = vadd.f32 %v83_v28, %v80_v26  ;;  %v98_v33 = vrot.slane %v97_v29, 4  ;;  %v215_v28 = vld [vmem:[#allocation5 + $0x140] sm:$0xff] }
  0xb3   :  { %233 = vmatpush.msrb.mxu2 %v215_v28  ;;  %v321_v28 = vld [vmem:[#allocation5 + $0x260] sm:$0xff] }
  0xb4   :  { %v85_v35 = vrot.slane %v84_v32, 2  ;;  %v99_v36 = vadd.f32 %v98_v33, %v97_v29 }
  0xb5   :  { %234 = vmatpush.msrb.mxu2 %v214_v31  ;;  %v318_v31 = vld [vmem:[#allocation5 + $0x248] sm:$0xff] }
  0xb6   :  { %v86_v39 = vadd.f32 %v85_v35, %v84_v32  ;;  %v100_v40 = vrot.slane %v99_v36, 2 }
  0xb7   :  { %235 = vmatpush.msrb.mxu2 %v213_v34  ;;  %v317_v34 = vld [vmem:[#allocation5 + $0x240] sm:$0xff] }
  0xb8   :  { %v87_v42 = vrot.slane %v86_v39, 1  ;;  %v101_v43 = vadd.f32 %v100_v40, %v99_v36 }
  0xb9   :  { %236 = vmatpush.msrb.mxu2 %v212_v37 }
  0xba   :  { %v88_v46 = vadd.f32 %v87_v42, %v86_v39  ;;  %v102_v47 = vrot.slane %v101_v43, 1 }
  0xbb   :  { %237 = vmatpush.msrb.mxu2 %v211_v38 }
  0xbc   :  { %v96_v50 = vmul.f32 %v563_v44, %v88_v46  ;;  %v103_v51 = vadd.f32 %v102_v47, %v101_v43  ;;  %v208_v47 = vld [vmem:[#allocation5 + $0x108] sm:$0xff] }
  0xbd   :  { %238 = vmatpush.msrb.mxu2 %v210_v41 }
  0xbe   :  { %v104_v53 = vmul.f32 %v103_v51, %v563_v44  ;;  %v105_v54 = vmul.f32 %v96_v50, %v96_v50 }
  0xbf   :  { %239 = vmatpush.msrb.mxu2 %v209_v45 }
  0xc0   :  { %v106_v56 = vsub.f32 %v104_v53, %v105_v54 }
  0xc1   :  { %240 = vmatpush.msrb.mxu2 %v208_v47 }
  0xc2   :  { %v107_v58 = vadd.f32 1e-05, %v106_v56 }
  0xc4   :  { %444 = vrsqrt.f32 %v107_v58  ;;  %vm114_vm2 = vweird.f32 %v107_v58 }
  0xca   :  { %v445_v59 = vpop.eup %444 }
  0xcb   :  { %v109_v60 = vmul.f32 %v445_v59, %v107_v58  ;;  %vm115_vm1 = vweird.f32 %v445_v59 }
  0xcc   :  { %vm116_vm3 = vmor %vm114_vm2, %vm115_vm1 }
  0xcd   :  { %v110_v61 = vmul.f32 %v445_v59, %v109_v60 }
  0xcf   :  { %v111_v62 = vmul.f32 0.5, %v110_v61 }
  0xd1   :  { %v112_v63 = vsub.f32 1.5, %v111_v62 }
  0xd3   :  { %v113_v1 = vmul.f32 %v445_v59, %v112_v63 }
  0xd5   :  { %v117_v2 = vsel %vm116_vm3, %v445_v59, %v113_v1 }
  0xd6   :  { %v118_v3 = vmul.f32 %v117_v2, %v567_v0  ;;  %v279_v2 = vld [vmem:[#allocation5 + $0x200] sm:$0xff] }
  0xd7   :  { %281 = vmatpush.msra.mxu3 %v279_v2  ;;  %v360_v2 = vld [vmem:[#allocation5 + $0x2a8] sm:$0xff] }
  0xd8   :  { %v121_v4 = vmul.f32 %v118_v3, %v96_v50  ;;  %v119_v5 = vperm.slane %v118_v3, 0  ;;  %v278_v3 = vld [vmem:[#allocation5 + $0x1f8] sm:$0xff] }
  0xd9   :  { %282 = vmatpush.msra.mxu3 %v278_v3 }
  0xda   :  { %v123_v6 = vrot.slane %v121_v4, 7  ;;  %v120_v8 = vmul.f32 %v119_v5, %v80_v26  ;;  %v277_v4 = vld [vmem:[#allocation5 + $0x1f0] sm:$0xff]  ;;  %v276_v5 = vld [vmem:[#allocation5 + $0x1e8] sm:$0xff] }
  0xdb   :  { %283 = vmatpush.msra.mxu3 %v277_v4  ;;  %v359_v4 = vld [vmem:[#allocation5 + $0x2a0] sm:$0xff] }
  0xdc   :  { %v125_v7 = vsub.f32 %v567_v0, %v123_v6  ;;  %v275_v6 = vld [vmem:[#allocation5 + $0x1e0] sm:$0xff] }
  0xdd   :  { %284 = vmatpush.msra.mxu3 %v276_v5 }
  0xde   :  { %v126_v9 = vperm.slane %v125_v7, 1  ;;  %v274_v7 = vld [vmem:[#allocation5 + $0x1d8] sm:$0xff] }
  0xdf   :  { %285 = vmatpush.msra.mxu3 %v275_v6 }
  0xe0   :  { %v127_v10 = vadd.f32 %v126_v9, %v120_v8  ;;  %v273_v8 = vld [vmem:[#allocation5 + $0x1d0] sm:$0xff]  ;;  %v272_v9 = vld [vmem:[#allocation5 + $0x1c8] sm:$0xff] }
  0xe1   :  { %286 = vmatpush.msra.mxu3 %v274_v7 }
  0xe2   :  { %vm128_vm4 = vcmp.gt.f32.partialorder %v127_v10, 0.0  ;;  %v129_v11 = vmul.f32 0.01, %v127_v10 }
  0xe3   :  { %287 = vmatpush.msra.mxu3 %v273_v8 }
  0xe4   :  { %v130_v12 = vsel %vm128_vm4, %v127_v10, %v129_v11  ;;  %v271_v10 = vld [vmem:[#allocation5 + $0x1c0] sm:$0xff]  ;;  %v270_v11 = vld [vmem:[#allocation5 + $0x1b8] sm:$0xff] }
  0xe5   :  { %163 = vmatmul.f32.vlgmr.msra.gmra.mxu1 %v130_v12  ;;  %288 = vmatpush.msra.mxu3 %v272_v9  ;;  %v269_v12 = vld [vmem:[#allocation5 + $0x1b0] sm:$0xff] }
  0xe7   :  { %289 = vmatpush.msra.mxu3 %v271_v10  ;;  %v358_v10 = vld [vmem:[#allocation5 + $0x298] sm:$0xff] }
  0xe9   :  { %290 = vmatpush.msra.mxu3 %v270_v11  ;;  %v357_v11 = vld [vmem:[#allocation5 + $0x290] sm:$0xff] }
  0xeb   :  { %291 = vmatpush.msra.mxu3 %v269_v12  ;;  %v356_v12 = vld [vmem:[#allocation5 + $0x288] sm:$0xff] }
  0xed   :  { %292 = vmatpush.msra.mxu3 %v268_v13  ;;  %v326_v13 = vperm.slane %v567_v0, 6 }
  0xef   :  { %293 = vmatpush.msra.mxu3 %v267_v14 }
  0xf1   :  { %294 = vmatpush.msra.mxu3 %v266_v15 }
  0xf3   :  { %295 = vmatpush.msra.mxu3 %v265_v16 }
  0xf5   :  { %296 = vmatpush.msra.mxu3 %v264_v17 }
 0x162   :  { %v164_v18 = vpop.f32.mrf.mxu1 }
 0x163   :  { %v167_v20 = vrot.slane %v164_v18, 4  ;;  %v174_v21 = vmul.f32 %v164_v18, %v164_v18 }
 0x165   :  { %v168_v23 = vadd.f32 %v167_v20, %v164_v18  ;;  %v175_v24 = vrot.slane %v174_v21, 4 }
 0x167   :  { %v169_v26 = vrot.slane %v168_v23, 2  ;;  %v176_v27 = vadd.f32 %v175_v24, %v174_v21  ;;  %v323_v24 = vld [vmem:[#allocation5 + $0x270] sm:$0xff] }
 0x169   :  { %v170_v29 = vadd.f32 %v169_v26, %v168_v23  ;;  %v177_v30 = vrot.slane %v176_v27, 2  ;;  %v324_v23 = vld [vmem:[#allocation5 + $0x278] sm:$0xff]  ;;  %v322_v26 = vld [vmem:[#allocation5 + $0x268] sm:$0xff] }
 0x16a   :  { %328 = vmatpush.msra.mxu0 %v324_v23 }
 0x16b   :  { %v171_v32 = vrot.slane %v170_v29, 1  ;;  %v178_v33 = vadd.f32 %v177_v30, %v176_v27  ;;  %v319_v30 = vld [vmem:[#allocation5 + $0x250] sm:$0xff] }
 0x16c   :  { %329 = vmatpush.msra.mxu0 %v323_v24 }
 0x16d   :  { %v172_v35 = vadd.f32 %v171_v32, %v170_v29  ;;  %v179_v36 = vrot.slane %v178_v33, 1  ;;  %v320_v29 = vld [vmem:[#allocation5 + $0x258] sm:$0xff] }
 0x16e   :  { %330 = vmatpush.msra.mxu0 %v322_v26 }
 0x16f   :  { %v173_v39 = vmul.f32 %v172_v35, %v563_v44  ;;  %v180_v40 = vadd.f32 %v179_v36, %v178_v33  ;;  %v316_v36 = vld [vmem:[#allocation5 + $0x238] sm:$0xff] }
 0x170   :  { %331 = vmatpush.msra.mxu0 %v321_v28 }
 0x171   :  { %v181_v42 = vmul.f32 %v180_v40, %v563_v44  ;;  %v182_v43 = vmul.f32 %v173_v39, %v173_v39  ;;  %v315_v40 = vld [vmem:[#allocation5 + $0x230] sm:$0xff] }
 0x172   :  { %332 = vmatpush.msra.mxu0 %v320_v29 }
 0x173   :  { %v183_v46 = vsub.f32 %v181_v42, %v182_v43  ;;  %v314_v42 = vld [vmem:[#allocation5 + $0x228] sm:$0xff] }
 0x174   :  { %333 = vmatpush.msra.mxu0 %v319_v30 }
 0x175   :  { %v184_v48 = vadd.f32 1e-05, %v183_v46  ;;  %v313_v46 = vld [vmem:[#allocation5 + $0x220] sm:$0xff] }
 0x176   :  { %334 = vmatpush.msra.mxu0 %v318_v31 }
 0x177   :  { %446 = vrsqrt.f32 %v184_v48  ;;  %vm191_vm6 = vweird.f32 %v184_v48 }
 0x178   :  { %335 = vmatpush.msra.mxu0 %v317_v34 }
 0x17a   :  { %336 = vmatpush.msra.mxu0 %v316_v36 }
 0x17c   :  { %337 = vmatpush.msra.mxu0 %v315_v40 }
 0x17d   :  { %v447_v49 = vpop.eup %446 }
 0x17e   :  { %v186_v50 = vmul.f32 %v447_v49, %v184_v48  ;;  %vm192_vm5 = vweird.f32 %v447_v49  ;;  %338 = vmatpush.msra.mxu0 %v314_v42  ;;  %v45_v48 = vld [vmem:[#allocation2 + $0x8] sm:$0xff] }
 0x17f   :  { %vm193_vm7 = vmor %vm191_vm6, %vm192_vm5 }
 0x180   :  { %v187_v51 = vmul.f32 %v447_v49, %v186_v50  ;;  %339 = vmatpush.msra.mxu0 %v313_v46  ;;  %v311_v50 = vld [vmem:[#allocation5 + $0x210] sm:$0xff] }
 0x182   :  { %v188_v52 = vmul.f32 0.5, %v187_v51  ;;  %v310_v51 = vld [vmem:[#allocation5 + $0x208] sm:$0xff] }
 0x184   :  { %v189_v53 = vsub.f32 1.5, %v188_v52  ;;  %v371_v52 = vld [vmem:[#allocation5 + $0x300] sm:$0xff] }
 0x185   :  { %420 = vmatpush.msrb.mxu1 %v371_v52 }
 0x186   :  { %v190_v54 = vmul.f32 %v447_v49, %v189_v53  ;;  %v370_v53 = vld [vmem:[#allocation5 + $0x2f8] sm:$0xff] }
 0x187   :  { %421 = vmatpush.msrb.mxu1 %v370_v53 }
 0x188   :  { %v194_v44 = vsel %vm193_vm7, %v447_v49, %v190_v54  ;;  %v312_v49 = vld [vmem:[#allocation5 + $0x218] sm:$0xff]  ;;  %v369_v54 = vld [vmem:[#allocation5 + $0x2f0] sm:$0xff] }
 0x189   :  { %v195_v55 = vmul.f32 %v194_v44, %v567_v0  ;;  %340 = vmatpush.msra.mxu0 %v312_v49  ;;  %v368_v44 = vld [vmem:[#allocation5 + $0x2e8] sm:$0xff]  ;;  %422 = vmatpush.msrb.mxu1 %v369_v54 }
 0x18b   :  { %v198_v56 = vmul.f32 %v195_v55, %v173_v39  ;;  %v196_v57 = vperm.slane %v195_v55, 2  ;;  %341 = vmatpush.msra.mxu0 %v311_v50  ;;  %v367_v55 = vld [vmem:[#allocation5 + $0x2e0] sm:$0xff]  ;;  %423 = vmatpush.msrb.mxu1 %v368_v44 }
 0x18d   :  { %v200_v58 = vrot.slane %v198_v56, 7  ;;  %v197_v60 = vmul.f32 %v196_v57, %v164_v18  ;;  %v224_v18 = vperm.slane %v567_v0, 4  ;;  %342 = vmatpush.msra.mxu0 %v310_v51  ;;  %v366_v56 = vld [vmem:[#allocation5 + $0x2d8] sm:$0xff]  ;;  %424 = vmatpush.msrb.mxu1 %v367_v55  ;;  %v365_v57 = vld [vmem:[#allocation5 + $0x2d0] sm:$0xff] }
 0x18f   :  { %v202_v59 = vsub.f32 %v567_v0, %v200_v58  ;;  %373 = vmatpush.msrb.mxu0 %v371_v52  ;;  %425 = vmatpush.msrb.mxu1 %v366_v56  ;;  %v364_v58 = vld [vmem:[#allocation5 + $0x2c8] sm:$0xff] }
 0x191   :  { %v203_v61 = vperm.slane %v202_v59, 3  ;;  %374 = vmatpush.msrb.mxu0 %v370_v53  ;;  %426 = vmatpush.msrb.mxu1 %v365_v57  ;;  %v363_v59 = vld [vmem:[#allocation5 + $0x2c0] sm:$0xff] }
 0x193   :  { %v204_v62 = vadd.f32 %v203_v61, %v197_v60  ;;  %375 = vmatpush.msrb.mxu0 %v369_v54  ;;  %v280_v60 = vperm.slane %v567_v0, 5  ;;  %427 = vmatpush.msrb.mxu1 %v364_v58  ;;  %v362_v61 = vld [vmem:[#allocation5 + $0x2b8] sm:$0xff] }
 0x195   :  { %vm205_vm8 = vcmp.gt.f32.partialorder %v204_v62, 0.0  ;;  %v206_v63 = vmul.f32 0.01, %v204_v62  ;;  %376 = vmatpush.msrb.mxu0 %v368_v44  ;;  %428 = vmatpush.msrb.mxu1 %v363_v59 }
 0x197   :  { %v207_v1 = vsel %vm205_vm8, %v204_v62, %v206_v63  ;;  %377 = vmatpush.msrb.mxu0 %v367_v55  ;;  %v361_v63 = vld [vmem:[#allocation5 + $0x2b0] sm:$0xff]  ;;  %429 = vmatpush.msrb.mxu1 %v362_v61 }
 0x198   :  { %241 = vmatmul.f32.vlgmr.msrb.gmra.mxu2 %v207_v1 }
 0x199   :  { %378 = vmatpush.msrb.mxu0 %v366_v56  ;;  %430 = vmatpush.msrb.mxu1 %v361_v63 }
 0x19b   :  { %379 = vmatpush.msrb.mxu0 %v365_v57  ;;  %431 = vmatpush.msrb.mxu1 %v360_v2 }
 0x19d   :  { %380 = vmatpush.msrb.mxu0 %v364_v58  ;;  %432 = vmatpush.msrb.mxu1 %v359_v4 }
 0x19f   :  { %381 = vmatpush.msrb.mxu0 %v363_v59  ;;  %433 = vmatpush.msrb.mxu1 %v358_v10 }
 0x1a1   :  { %382 = vmatpush.msrb.mxu0 %v362_v61  ;;  %434 = vmatpush.msrb.mxu1 %v357_v11 }
 0x1a3   :  { %383 = vmatpush.msrb.mxu0 %v361_v63  ;;  %435 = vmatpush.msrb.mxu1 %v356_v12 }
 0x1a5   :  { %384 = vmatpush.msrb.mxu0 %v360_v2 }
 0x1a7   :  { %385 = vmatpush.msrb.mxu0 %v359_v4 }
 0x1a9   :  { %386 = vmatpush.msrb.mxu0 %v358_v10 }
 0x1ab   :  { %387 = vmatpush.msrb.mxu0 %v357_v11 }
 0x1ad   :  { %388 = vmatpush.msrb.mxu0 %v356_v12 }
 0x21b   :  { %v242_v19 = vpop.f32.mrf.mxu2 }
 0x21c   :  { %v243_v20 = vadd.f32 %v242_v19, %v224_v18 }
 0x21e   :  { %v419_v21 = vmul.f32 -1.442695, %v243_v20 }
 0x220   :  { %448 = vpow2.f32 %v419_v21 }
 0x226   :  { %v449_v25 = vpop.eup %448 }
 0x227   :  { %v248_v27 = vadd.f32 1.0, %v449_v25 }
 0x229   :  { %450 = vrcp.f32 %v248_v27  ;;  %v260_v37 = vand.u32 2147483648, %v248_v27  ;;  %v258_v39 = vand.u32 2147483647, %v248_v27  ;;  %vm254_vm10 = vweird.f32 %v248_v27 }
 0x22b   :  { %v261_v43 = vor.u32 1.1754944e-38, %v260_v37  ;;  %vm259_vm12 = vcmp.eq.f32.partialorder %v258_v39, 8.507059e+37 }
 0x22f   :  { %v451_v32 = vpop.eup %450 }
 0x230   :  { %v250_v33 = vmul.f32 %v451_v32, %v248_v27  ;;  %vm255_vm9 = vweird.f32 %v451_v32 }
 0x231   :  { %vm256_vm11 = vmor %vm254_vm10, %vm255_vm9 }
 0x232   :  { %v251_v35 = vsub.f32 1.0, %v250_v33 }
 0x234   :  { %v252_v38 = vmul.f32 %v451_v32, %v251_v35 }
 0x236   :  { %v253_v41 = vadd.f32 %v451_v32, %v252_v38 }
 0x238   :  { %v257_v45 = vsel %vm256_vm11, %v451_v32, %v253_v41 }
 0x239   :  { %v262_v47 = vsel %vm259_vm12, %v261_v43, %v257_v45 }
 0x23a   :  { %297 = vmatmul.f32.vlgmr.msra.gmra.mxu3 %v262_v47  ;;  %396 = vst [vmem:[#allocation7] sm:$0xff] %v262_v47 }
 0x242   :  { %300 = vmatmul.f32.gmra.mxu3 %v45_v48 }
 0x2bd   :  { %v298_v62 = vpop.f32.mrf.mxu3 }
 0x2be   :  { %v299_v1 = vadd.f32 %v298_v62, %v280_v60 }
 0x2c0   :  { %vm304_vm13 = vcmp.gt.f32.partialorder %v299_v1, 0.0  ;;  %v306_v3 = vmul.f32 0.01, %v299_v1 }
 0x2c2   :  { %v308_v5 = vsel %vm304_vm13, %v299_v1, %v306_v3 }
 0x2c3   :  { %343 = vmatmul.f32.vlgmr.msra.gmra.mxu0 %v308_v5 }
 0x2c5   :  { %v301_v6 = vpop.f32.mrf.mxu3 }
 0x2c6   :  { %v302_v7 = vadd.f32 %v301_v6, %v280_v60 }
 0x2c8   :  { %vm305_vm14 = vcmp.gt.f32.partialorder %v302_v7, 0.0  ;;  %v307_v8 = vmul.f32 0.01, %v302_v7 }
 0x2ca   :  { %v309_v9 = vsel %vm305_vm14, %v302_v7, %v307_v8 }
 0x2cb   :  { %346 = vmatmul.f32.gmra.mxu0 %v309_v9 }
 0x340   :  { %v344_v14 = vpop.f32.mrf.mxu0 }
 0x341   :  { %v345_v15 = vadd.f32 %v344_v14, %v326_v13 }
 0x343   :  { %v352_v16 = vmul.f32 0.01, %v345_v15  ;;  %vm350_vm15 = vcmp.gt.f32.partialorder %v345_v15, 0.0 }
 0x345   :  { %v354_v17 = vsel %vm350_vm15, %v345_v15, %v352_v16 }
 0x346   :  { %389 = vmatmul.f32.vlgmr.msrb.gmra.mxu0 %v354_v17 }
 0x348   :  { %v347_v18 = vpop.f32.mrf.mxu0 }
 0x349   :  { %v348_v19 = vadd.f32 %v347_v18, %v326_v13 }
 0x34b   :  { %v353_v20 = vmul.f32 0.01, %v348_v19  ;;  %vm351_vm0 = vcmp.gt.f32.partialorder %v348_v19, 0.0 }
 0x34d   :  { %v355_v21 = vsel %vm351_vm0, %v348_v19, %v353_v20 }
 0x34e   :  { %392 = vmatmul.f32.vlgmr.msrb.gmra.mxu1 %v355_v21 }
 0x3c3   :  { %v390_v23 = vpop.f32.mrf.mxu0 }
 0x3c4   :  { %v391_v24 = vadd.f32 %v390_v23, %v372_v22 }
 0x3c6   :  { %397 = vst [vmem:[#allocation7 + $0x8] sm:$0xff] %v391_v24 }
 0x3cb   :  { %v393_v25 = vpop.f32.mrf.mxu1 }
 0x3cc   :  { %v394_v26 = vadd.f32 %v393_v25, %v372_v22 }
 0x3ce   :  { %398 = vst [vmem:[#allocation7 + $0x10] sm:$0xff] %v394_v26 }
 0x3cf   :  { %411 = dma.vmem_to_hbm [thread:$0]  %s404_s1, 384, %s406_s23, [#allocation4], %s531_s17, %s531_s17, %s532_s18  }
 0x3d0   :  { %528 = dma.done.wait [#allocation4], 384  }
 0x3d1   :  { %529 = vsyncadd [#allocation4], 4294966912 }
 0x3d2   :  { %416 = vsyncpa [#allocation3], 1 }
 0x3d3   :  { %417 = vsyncpa [#allocation6], 1 }
 0x3d4   :  { %418 = vsyncpa [#allocation4], 1 }

</bundles_post_ra>
